<compile_context>
chip_gen: v5e
topology: v5e:2x2
jax: 0.10.0
libtpu: 0.0.40
codegen_flags: <defaults>
</compile_context>

<pallas_src>
import jax
import jax.numpy as jnp
from jax.experimental import pallas as pl
from jax.experimental.pallas import tpu as pltpu


# ----------------------------------------------------------------------------
# VMEM sizing
# ----------------------------------------------------------------------------
def _vmem_sizing(vmem_budget_bytes=None):
    """Return (tile_budget_bytes, scoped_vmem_limit_bytes) for this chip."""
    phys = None
    try:
        info = pltpu.get_tpu_info()
        for attr in ("vmem_capacity_bytes", "vmem_bytes", "vmem_size_bytes"):
            val = getattr(info, attr, None)
            if val:
                phys = int(val)
                break
    except Exception:
        phys = None
    if not phys:
        phys = 64 * 1024 * 1024  # conservative (v7x-sized) fallback
    # Scoped limit: leave headroom for compiler-internal scratch / semaphores.
    limit = max(32 * 1024 * 1024, min(phys - 16 * 1024 * 1024, 100 * 1024 * 1024))
    if vmem_budget_bytes is None:
        vmem_budget_bytes = (3 * limit) // 4  # tiles take ~75%, rest is slack
    return min(int(vmem_budget_bytes), limit), limit


# ----------------------------------------------------------------------------
# Kernel bodies
# ----------------------------------------------------------------------------
def _excite(y, w1_ref, w2_ref):
    """sigmoid(relu(y @ w1.T) @ w2.T) in f32.  y: (TB, C) -> (TB, C)."""
    w1 = w1_ref[...].astype(jnp.float32)  # (H, C)
    w2 = w2_ref[...].astype(jnp.float32)  # (C, H)
    h = jax.lax.dot_general(y, w1, (((1,), (1,)), ((), ())),
                            preferred_element_type=jnp.float32)   # (TB, H)
    h = jnp.maximum(h, 0.0)
    s = jax.lax.dot_general(h, w2, (((1,), (1,)), ((), ())),
                            preferred_element_type=jnp.float32)   # (TB, C)
    return jax.nn.sigmoid(s)


def _se_fused_kernel(x_ref, w1_ref, w2_ref, o_ref):
    # Squeeze: f32-accumulated mean over the lane axis (the f32 upcast is not
    # kept live as a second full-tile copy).
    y = jnp.mean(x_ref[...].astype(jnp.float32), axis=-1)         # (TB, C)
    s = _excite(y, w1_ref, w2_ref)                                 # (TB, C)
    # Scale in the input dtype (no materialized f32 copy of the x tile).
    o_ref[...] = x_ref[...] * s.astype(o_ref.dtype)[:, :, None]


def _make_pool_kernel(lane_tile, seq_len):
    tail = seq_len % lane_tile  # static Python int

    def kernel(x_ref, acc_ref):
        @pl.when(pl.program_id(1) == 0)
        def _():
            acc_ref[...] = jnp.zeros_like(acc_ref)

        xf = x_ref[...].astype(jnp.float32)                        # (TB, C, TL)
        if tail:  # static branch: mask padded lanes of the final L block
            lane = jax.lax.broadcasted_iota(jnp.int32, xf.shape, 2)
            xf = jnp.where(pl.program_id(1) * lane_tile + lane < seq_len, xf, 0.0)
        acc_ref[...] += jnp.sum(xf, axis=-1)[:, None, :]           # (TB, 1, C)

    return kernel


def _se_scale_kernel(mean_ref, w1_ref, w2_ref, x_ref, o_ref):
    y = mean_ref[...][:, 0, :]                                     # (TB, C) f32
    # Tiny MLP, recomputed per (b, l) tile; hidden under the x DMA.
    s = _excite(y, w1_ref, w2_ref)
    o_ref[...] = x_ref[...] * s.astype(o_ref.dtype)[:, :, None]


# ----------------------------------------------------------------------------
# Fused single-pass path (row (C, L) fits in VMEM)
# ----------------------------------------------------------------------------
def _se_fused(x, w1, w2, budget, vmem_limit, row_bytes):
    B, C, L = x.shape
    H = w1.shape[0]
    itemsize = jnp.dtype(x.dtype).itemsize

    batch_tile = max(1, min(B, budget // max(row_bytes, 1)))
    # Keep >= min(B, 4) grid steps: preserves DMA/compute pipelining and gives
    # the "parallel" axis >= 2 blocks for v7x's two TensorCores.
    batch_tile = min(batch_tile, pl.cdiv(B, min(B, 4)))
    grid = (pl.cdiv(B, batch_tile),)

    cost = pl.CostEstimate(
        flops=3 * B * C * L + 4 * B * C * H,
        transcendentals=B * C,
        bytes_accessed=2 * B * C * L * itemsize
        + 2 * H * C * jnp.dtype(w1.dtype).itemsize,
    )
    return pl.pallas_call(
        _se_fused_kernel,
        out_shape=jax.ShapeDtypeStruct((B, C, L), x.dtype),
        grid_spec=pltpu.PrefetchScalarGridSpec(
            num_scalar_prefetch=0,
            grid=grid,
            in_specs=[
                pl.BlockSpec((batch_tile, C, L), lambda b: (b, 0, 0)),
                pl.BlockSpec((H, C), lambda b: (0, 0)),   # resident weights
                pl.BlockSpec((C, H), lambda b: (0, 0)),   # resident weights
            ],
            out_specs=pl.BlockSpec((batch_tile, C, L), lambda b: (b, 0, 0)),
        ),
        compiler_params=pltpu.CompilerParams(
            dimension_semantics=("parallel",),
            vmem_limit_bytes=vmem_limit),
        cost_estimate=cost,
    )(x, w1, w2)


# ----------------------------------------------------------------------------
# Two-phase path (L-tiled): pool kernel + scale kernel
# ----------------------------------------------------------------------------
def _pick_lane_tile(L):
    if L <= 512:
        return L                        # full rows: no partial lane blocks
    for t in (512, 384, 256, 128):      # lane-dense multiples of 128
        if L % t == 0:
            return t
    return 512                          # tail is masked inside the pool kernel


def _se_two_phase(x, w1, w2, budget, vmem_limit):
    B, C, L = x.shape
    H = w1.shape[0]
    itemsize = jnp.dtype(x.dtype).itemsize

    lane_tile = _pick_lane_tile(L)
    # Per-batch-row VMEM for the scale kernel (the heavier of the two):
    # double-buffered in+out (C, lane_tile) tiles + ~2 f32 temporaries + gate.
    row_bytes = 4 * C * lane_tile * itemsize + 2 * C * lane_tile * 4 + 8 * C * 4
    batch_tile = max(1, min(B, budget // max(row_bytes, 1)))
    if B >= 2:  # >= 2 batch blocks so the "parallel" axis can use both v7x TCs
        batch_tile = min(batch_tile, pl.cdiv(B, 2))
    bg, lg = pl.cdiv(B, batch_tile), pl.cdiv(L, lane_tile)

    # Phase 1: channel sums accumulated across L tiles into a resident output
    # block (reduction axis last, marked "arbitrary"). Shape (B, 1, C) keeps
    # the block layout legal for any batch_tile.
    sums = pl.pallas_call(
        _make_pool_kernel(lane_tile, L),
        out_shape=jax.ShapeDtypeStruct((B, 1, C), jnp.float32),
        grid_spec=pltpu.PrefetchScalarGridSpec(
            num_scalar_prefetch=0,
            grid=(bg, lg),
            in_specs=[pl.BlockSpec((batch_tile, C, lane_tile),
                                   lambda b, l: (b, 0, l))],
            out_specs=pl.BlockSpec((batch_tile, 1, C), lambda b, l: (b, 0, 0)),
        ),
        compiler_params=pltpu.CompilerParams(
            dimension_semantics=("parallel", "arbitrary"),
            vmem_limit_bytes=vmem_limit),
    )(x)
    means = sums / L                    # tiny (B, 1, C) elementwise op in XLA

    # Phase 2: excitation (tiny, recomputed per tile) + broadcast scale.
    cost = pl.CostEstimate(
        flops=B * C * L + 4 * bg * lg * batch_tile * C * H,
        transcendentals=bg * lg * batch_tile * C,
        bytes_accessed=2 * B * C * L * itemsize + B * C * 4,
    )
    return pl.pallas_call(
        _se_scale_kernel,
        out_shape=jax.ShapeDtypeStruct((B, C, L), x.dtype),
        grid_spec=pltpu.PrefetchScalarGridSpec(
            num_scalar_prefetch=0,
            grid=(bg, lg),
            in_specs=[
                pl.BlockSpec((batch_tile, 1, C), lambda b, l: (b, 0, 0)),
                pl.BlockSpec((H, C), lambda b, l: (0, 0)),
                pl.BlockSpec((C, H), lambda b, l: (0, 0)),
                pl.BlockSpec((batch_tile, C, lane_tile), lambda b, l: (b, 0, l)),
            ],
            out_specs=pl.BlockSpec((batch_tile, C, lane_tile),
                                   lambda b, l: (b, 0, l)),
        ),
        compiler_params=pltpu.CompilerParams(
            dimension_semantics=("parallel", "parallel"),
            vmem_limit_bytes=vmem_limit),
        cost_estimate=cost,
    )(means, w1, w2, x)


# ----------------------------------------------------------------------------
# Public entry point
# ----------------------------------------------------------------------------
def se_block(x, w1, w2, *, vmem_budget_bytes=None, force_two_phase=False):
    """Pallas SEBlock forward.

    x:  (B, C, L)   activations (f32 or bf16)
    w1: (H, C)      fc1.weight (H = C // reduction, no bias)
    w2: (C, H)      fc2.weight (no bias)
    """
    B, C, L = x.shape
    H, C1 = w1.shape
    assert C1 == C and w2.shape == (C, H), "weight shapes must match SEBlock"

    budget, vmem_limit = _vmem_sizing(vmem_budget_bytes)
    itemsize = jnp.dtype(x.dtype).itemsize
    # Fused-path per-batch-row VMEM: double-buffered in+out (C, L) tiles plus
    # ~2 f32-sized in-kernel temporaries (reduction input + scale product).
    fused_row_bytes = 4 * C * L * itemsize + 2 * C * L * 4

    if not force_two_phase and fused_row_bytes <= budget:
        return _se_fused(x, w1, w2, budget, vmem_limit, fused_row_bytes)
    # Rows too large for VMEM (or forced): L-tiled pool pass + scale pass.
    return _se_two_phase(x, w1, w2, budget, vmem_limit)


# ----------------------------------------------------------------------------
# Reference + demo
# ----------------------------------------------------------------------------
def _se_block_ref(x, w1, w2):
    y = jnp.mean(x.astype(jnp.float32), axis=-1)
    h = jax.nn.relu(y @ w1.astype(jnp.float32).T)
    s = jax.nn.sigmoid(h @ w2.astype(jnp.float32).T)
    return (x.astype(jnp.float32) * s[..., None]).astype(x.dtype)


if __name__ == "__main__":
    key = jax.random.PRNGKey(0)
    kx, k1, k2 = jax.random.split(key, 3)

    # Small shapes consistent with the module: channel=64, reduction=16 -> H=4.
    B, C, L, reduction = 4, 64, 16, 16
    H = C // reduction

    x = jax.random.normal(kx, (B, C, L), dtype=jnp.float32)
    w1 = jax.random.normal(k1, (H, C), dtype=jnp.float32) * (1.0 / C ** 0.5)
    w2 = jax.random.normal(k2, (C, H), dtype=jnp.float32) * (1.0 / H ** 0.5)

    ref = _se_block_ref(x, w1, w2)

    out = jax.block_until_ready(se_block(x, w1, w2))
    assert out.shape == ref.shape, (out.shape, ref.shape)
    err = float(jnp.max(jnp.abs(out - ref)))
    assert jnp.allclose(out, ref, rtol=1e-5, atol=1e-5), err

    # Also exercise the large-row (two-phase, L-tiled) path on the same data.
    out2 = jax.block_until_ready(se_block(x, w1, w2, force_two_phase=True))
    err2 = float(jnp.max(jnp.abs(out2 - ref)))
    assert jnp.allclose(out2, ref, rtol=1e-5, atol=1e-5), err2

    print("KERNEL_OK")
</pallas_src>

<mosaic_0001>
module attributes {stable_mosaic.version = 11 : i64} {
  func.func @_se_fused_kernel(%arg0: i32, %arg1: memref<1x64x16xf32, #tpu.memory_space<vmem>>, %arg2: memref<4x64xf32, #tpu.memory_space<vmem>>, %arg3: memref<64x4xf32, #tpu.memory_space<vmem>>, %arg4: memref<1x64x16xf32, #tpu.memory_space<vmem>>) attributes {dimension_semantics = [#tpu.dimension_semantics<parallel>], iteration_bounds = array<i64: 4>, scalar_prefetch = 0 : i64, scratch_operands = 0 : i64, tpu.core_type = #tpu.core_type<tc>, window_params = [{transform_indices = @transform_0, window_bounds = array<i64: 1, 64, 16>}, {pipeline_mode = #tpu.pipeline_mode<synchronous>, transform_indices = @transform_1, window_bounds = array<i64: 4, 64>}, {pipeline_mode = #tpu.pipeline_mode<synchronous>, transform_indices = @transform_2, window_bounds = array<i64: 64, 4>}, {transform_indices = @transform_3, window_bounds = array<i64: 1, 64, 16>}]} {
    %c0 = arith.constant 0 : index
    %c0_0 = arith.constant 0 : index
    %c0_1 = arith.constant 0 : index
    %0 = vector.load %arg1[%c0, %c0_0, %c0_1] : memref<1x64x16xf32, #tpu.memory_space<vmem>>, vector<1x64x16xf32>
    %cst = arith.constant dense<0.000000e+00> : vector<1x64xf32>
    %1 = vector.multi_reduction <add>, %0, %cst [2] : vector<1x64x16xf32> to vector<1x64xf32>
    %cst_2 = arith.constant 1.600000e+01 : f32
    %2 = vector.broadcast %cst_2 : f32 to vector<1x64xf32>
    %3 = arith.divf %1, %2 : vector<1x64xf32>
    %c0_3 = arith.constant 0 : index
    %c0_4 = arith.constant 0 : index
    %4 = vector.load %arg2[%c0_3, %c0_4] : memref<4x64xf32, #tpu.memory_space<vmem>>, vector<4x64xf32>
    %c0_5 = arith.constant 0 : index
    %c0_6 = arith.constant 0 : index
    %5 = vector.load %arg3[%c0_5, %c0_6] : memref<64x4xf32, #tpu.memory_space<vmem>>, vector<64x4xf32>
    %cst_7 = arith.constant dense<0.000000e+00> : vector<1x4xf32>
    %6 = tpu.matmul %3, %4, %cst_7 {dimension_numbers = #tpu.dot_dimension_numbers<[1], [1], [0], [0], [0, 0, 1, 0], [], []>} : vector<1x64xf32>, vector<4x64xf32>, vector<1x4xf32> -> vector<1x4xf32>
    %cst_8 = arith.constant 0.000000e+00 : f32
    %7 = vector.broadcast %cst_8 : f32 to vector<1x4xf32>
    %8 = arith.maximumf %6, %7 : vector<1x4xf32>
    %cst_9 = arith.constant dense<0.000000e+00> : vector<1x64xf32>
    %9 = tpu.matmul %8, %5, %cst_9 {dimension_numbers = #tpu.dot_dimension_numbers<[1], [1], [0], [0], [0, 0, 1, 0], [], []>} : vector<1x4xf32>, vector<64x4xf32>, vector<1x64xf32> -> vector<1x64xf32>
    %10 = arith.negf %9 : vector<1x64xf32>
    %11 = math.exp %10 : vector<1x64xf32>
    %cst_10 = arith.constant 1.000000e+00 : f32
    %12 = vector.broadcast %cst_10 : f32 to vector<1x64xf32>
    %13 = arith.addf %12, %11 : vector<1x64xf32>
    %14 = arith.divf %12, %13 : vector<1x64xf32>
    %c0_11 = arith.constant 0 : index
    %c0_12 = arith.constant 0 : index
    %c0_13 = arith.constant 0 : index
    %15 = vector.load %arg1[%c0_11, %c0_12, %c0_13] : memref<1x64x16xf32, #tpu.memory_space<vmem>>, vector<1x64x16xf32>
    %16 = vector.shape_cast %14 : vector<1x64xf32> to vector<1x64x1xf32>
    %17 = vector.broadcast %16 : vector<1x64x1xf32> to vector<1x64x16xf32>
    %18 = arith.mulf %15, %17 : vector<1x64x16xf32>
    %c0_14 = arith.constant 0 : index
    %c0_15 = arith.constant 0 : index
    %c0_16 = arith.constant 0 : index
    %19 = vector.load %arg4[%c0_14, %c0_15, %c0_16] : memref<1x64x16xf32, #tpu.memory_space<vmem>>, vector<1x64x16xf32>
    tpu.vector_store %arg4[%c0_14, %c0_15, %c0_16], %18 {strides = array<i32>} : memref<1x64x16xf32, #tpu.memory_space<vmem>>, vector<1x64x16xf32>,
    return
  }
  func.func @transform_0(%arg0: i32) -> (i32, i32, i32) {
    %c0_i32 = arith.constant 0 : i32
    %c0_i32_0 = arith.constant 0 : i32
    %c0_i32_1 = arith.constant 0 : i32
    return %arg0, %c0_i32, %c0_i32_0 : i32, i32, i32
  }
  func.func @transform_1(%arg0: i32) -> (i32, i32) {
    %c0_i32 = arith.constant 0 : i32
    %c0_i32_0 = arith.constant 0 : i32
    %c0_i32_1 = arith.constant 0 : i32
    return %c0_i32, %c0_i32_0 : i32, i32
  }
  func.func @transform_2(%arg0: i32) -> (i32, i32) {
    %c0_i32 = arith.constant 0 : i32
    %c0_i32_0 = arith.constant 0 : i32
    %c0_i32_1 = arith.constant 0 : i32
    return %c0_i32, %c0_i32_0 : i32, i32
  }
  func.func @transform_3(%arg0: i32) -> (i32, i32, i32) {
    %c0_i32 = arith.constant 0 : i32
    %c0_i32_0 = arith.constant 0 : i32
    %c0_i32_1 = arith.constant 0 : i32
    return %arg0, %c0_i32, %c0_i32_0 : i32, i32, i32
  }
}

</mosaic_0001>

<bundles_post_ra>
// kernel: tpu_custom_call.1
= control target key start
LH: loop header
LB: loop body
LE: loop exit
PB: predicated region body
PF: predicated region fallthrough
CT: control target
= control target key end

     0   :  { %s559_s12 = smov 0   ;;  %s671_s0 = inlined_call_operand.vmem [shape: f32[4,64,16], index: 0, kind: input, shape index: {}]   ;;  %s672_s1 = inlined_call_operand.vmem [shape: f32[4,64], index: 1, kind: input, shape index: {}]   ;;  %s673_s2 = inlined_call_operand.vmem [shape: f32[64,4], index: 2, kind: input, shape index: {}]   ;;  %s674_s3 = inlined_call_operand.vmem [shape: f32[4,64,16], index: 3, kind: output, shape index: {}]  }
   0x1 LB: > { %s481_s13 = sadd.s32 4294967295, %s536_s12   ;;  %p485_p0 = scmp.ge.s32.totalorder %s536_s12, 1  ;;  %s536_s12 = sphi %s559_s12, %s13_s12  }
   0x2   : > { %p137_p1 = scmp.lt.s32.totalorder %s536_s12, 5 }
   0x4   : > { %p138_p2 = pnand %p485_p0, %p137_p1 }
   0x5   : > { %p161_p3 = scmp.lt.s32.totalorder (!%p138_p2), %s481_s13, 3 }
   0x6   : > { %141 = sbr.rel (%p138_p2) target bundleno = 588 (0x24c), region = 32 }
   0xb   : > { %s676_s13 = smov (!%p161_p3, %s481_s13), 3  ;;  %vm179_vm0 = vcmask 130048   ;;  %v538_v16 = vmov 16.0   ;;  %v219_v18 = vld [vmem:[%s672_s1] sm:$0xf]  ;;  %vm267_vm1 = vcmask 523264   ;;  %v236_v26 = vlaneseq }
   0xc   : > { %s504_s14 = sshll.u32 %s676_s13, 6  ;;  %524 = vrcp.f32 %v538_v16  ;;  %490 = vmatpush.xpose.msk.msra.mxu0 %vm267_vm1, %v219_v18  ;;  %v227_v20 = vld [vmem:[%s673_s2 + $0x38] sm:$0xff]  ;;  %vm294_vm2 = vcmask 31744   ;;  %v226_v22 = vld [vmem:[%s673_s2 + $0x30] sm:$0xff]  ;;  %v225_v24 = vld [vmem:[%s673_s2 + $0x28] sm:$0xff]  ;;  %vm241_vm4 = vcmask 130112  }
   0xd   : > { %s165_s17 = scalar_lea.vmem %s671_s0, %s504_s14  ;;  %492 = vmatpush.xpose.msk.msra.mxu1 %vm294_vm2, %v227_v20  ;;  %v224_v30 = vld [vmem:[%s673_s2 + $0x20] sm:$0xff]  ;;  %v237_v32 = vand.u32 127, %v236_v26  ;;  %v223_v33 = vld [vmem:[%s673_s2 + $0x18] sm:$0xff]  ;;  %v222_v44 = vld [vmem:[%s673_s2 + $0x10] sm:$0xff]  ;;  %vm245_vm5 = vcmask 195712   ;;  %vm249_vm6 = vcmask 261312   ;;  %s170_s11 = scalar_lea.vmem %s674_s3, %s504_s14 }
   0xe   : > { %v575_v0 = vld [vmem:[%s165_s17] sm:$0xff]  ;;  %v577_v1 = vld [vmem:[%s165_s17 + $0x10] sm:$0xff]  ;;  %v587_v6 = vld [vmem:[%s165_s17 + $0x8] sm:$0xff]  ;;  %vm253_vm7 = vcmask 326912   ;;  %vm257_vm8 = vcmask 392512   ;;  %vm261_vm9 = vcmask 458112  }
   0xf   : > { %v579_v2 = vld [vmem:[%s165_s17 + $0x20] sm:$0xff]  ;;  %v180_v3 = vsel %vm179_vm0, %v575_v0, 0.0  ;;  %v186_v4 = vsel %vm179_vm0, %v577_v1, 0.0  ;;  %v589_v7 = vld [vmem:[%s165_s17 + $0x18] sm:$0xff]  ;;  %v591_v8 = vld [vmem:[%s165_s17 + $0x28] sm:$0xff]  ;;  %v183_v9 = vsel %vm179_vm0, %v587_v6, 0.0 }
  0x10   : > { %v192_v5 = vsel %vm179_vm0, %v579_v2, 0.0  ;;  %181 = vadd.xlane.f32.xlu0 %v180_v3  ;;  %187 = vadd.xlane.f32.xlu1 %v186_v4  ;;  %v189_v10 = vsel %vm179_vm0, %v589_v7, 0.0  ;;  %v195_v11 = vsel %vm179_vm0, %v591_v8, 0.0  ;;  %v599_v12 = vld [vmem:[%s165_s17 + $0x30] sm:$0xff]  ;;  %v601_v13 = vld [vmem:[%s165_s17 + $0x38] sm:$0xff]  ;;  %v239_v35 = vadd.s32 4294967288, %v237_v32 }
  0x11   : > { %193 = vadd.xlane.f32.xlu2 %v192_v5  ;;  %v198_v14 = vsel %vm179_vm0, %v599_v12, 0.0  ;;  %v201_v15 = vsel %vm179_vm0, %v601_v13, 0.0  ;;  %493 = vmatpush.xpose.msk.msra.mxu1 %vm294_vm2, %v226_v22  ;;  %v247_v36 = vadd.s32 4294967272, %v237_v32  ;;  %v243_v37 = vadd.s32 4294967280, %v237_v32  ;;  %v221_v54 = vld [vmem:[%s673_s2 + $0x8] sm:$0xff] }
  0x12   : > { %v525_v17 = vpop.eup %524  ;;  %v251_v45 = vadd.s32 4294967264, %v237_v32  ;;  %v255_v51 = vadd.s32 4294967256, %v237_v32  ;;  %v259_v58 = vadd.s32 4294967248, %v237_v32  ;;  %v263_v59 = vadd.s32 4294967240, %v237_v32 }
  0x13   : > { %v205_v19 = vmul.f32 16.0, %v525_v17  ;;  %vm209_vm3 = vweird.f32 %v525_v17  ;;  %vm265_vm10 = vcmask 523712   ;;  %v363_v18 = vshrl.u32 %v236_v26, 7 }
  0x15   : > { %v206_v21 = vsub.f32 1.0, %v205_v19  ;;  %494 = vmatpush.xpose.msk.msra.mxu1 %vm294_vm2, %v225_v24  ;;  %515 = vset.pattern.permute.xlu2 %v363_v18  ;;  %v376_v19 = vadd.s32 16, %v363_v18  ;;  %v370_v20 = vadd.s32 8, %v363_v18 }
  0x17   : > { %v207_v23 = vmul.f32 %v525_v17, %v206_v21  ;;  %517 = vset.pattern.permute.xlu1 %v376_v19  ;;  %516 = vset.pattern.permute.xlu0 %v370_v20 }
  0x18   : > { %184 = vadd.xlane.f32.xlu0 %v183_v9  ;;  %190 = vadd.xlane.f32.xlu1 %v189_v10 }
  0x19   : > { %196 = vadd.xlane.f32.xlu2 %v195_v11  ;;  %v208_v25 = vadd.f32 %v525_v17, %v207_v23  ;;  %495 = vmatpush.xpose.msk.msra.mxu1 %vm294_vm2, %v224_v30 }
  0x1b   : > { %v210_v31 = vsel %vm209_vm3, %v525_v17, %v208_v25 }
  0x1d   : > { %496 = vmatpush.xpose.msk.msra.mxu1 %vm294_vm2, %v223_v33 }
  0x20   : > { %199 = vadd.xlane.f32.xlu0 %v198_v14  ;;  %202 = vadd.xlane.f32.xlu1 %v201_v15  ;;  %v220_v15 = vld [vmem:[%s673_s2] sm:$0xff] }
  0x21   : > { %497 = vmatpush.xpose.msk.msra.mxu1 %vm294_vm2, %v222_v44 }
  0x25   : > { %498 = vmatpush.xpose.msk.msra.mxu1 %vm294_vm2, %v221_v54 }
  0x29   : > { %499 = vmatpush.xpose.msk.msra.mxu1 %vm294_vm2, %v220_v15 }
  0x83   : > { %v182_v27 = vpop.xlane.xlu0 %181  ;;  %v188_v28 = vpop.xlane.xlu1 %187 }
  0x84   : > { %v194_v29 = vpop.xlane.xlu2 %193  ;;  %v211_v34 = vmul.f32 %v210_v31, %v182_v27  ;;  %v213_v38 = vmul.f32 %v210_v31, %v188_v28 }
  0x85   : > { %v215_v47 = vmul.f32 %v210_v31, %v194_v29 }
  0x86   : > { %v238_v46 = vperm.slane %v211_v34, %v237_v32  ;;  %v244_v50 = vperm.slane %v213_v38, %v243_v37  ;;  %v382_v37 = vadd.s32 24, %v363_v18  ;;  %v406_v38 = vadd.s32 56, %v363_v18 }
  0x87   : > { %v252_v56 = vperm.slane %v215_v47, %v251_v45 }
  0x8b   : > { %v185_v39 = vpop.xlane.xlu0 %184  ;;  %v191_v40 = vpop.xlane.xlu1 %190 }
  0x8c   : > { %v212_v41 = vmul.f32 %v210_v31, %v185_v39  ;;  %v214_v42 = vmul.f32 %v210_v31, %v191_v40  ;;  %v197_v43 = vpop.xlane.xlu2 %196  ;;  %v388_v39 = vadd.s32 32, %v363_v18  ;;  %v400_v40 = vadd.s32 48, %v363_v18 }
  0x8d   : > { %v216_v52 = vmul.f32 %v210_v31, %v197_v43 }
  0x8e   : > { %v240_v48 = vperm.slane %v212_v41, %v239_v35  ;;  %v248_v49 = vperm.slane %v214_v42, %v247_v36  ;;  %v394_v36 = vadd.s32 40, %v363_v18 }
  0x8f   : > { %v256_v60 = vperm.slane %v216_v52, %v255_v51 }
  0x90   : > { %v242_v53 = vsel %vm241_vm4, %v240_v48, %v238_v46 }
  0x91   : > { %v246_v55 = vsel %vm245_vm5, %v244_v50, %v242_v53 }
  0x92   : > { %v250_v57 = vsel %vm249_vm6, %v248_v49, %v246_v55 }
  0x93   : > { %v200_v61 = vpop.xlane.xlu0 %199  ;;  %v203_v62 = vpop.xlane.xlu1 %202  ;;  %v254_v4 = vsel %vm253_vm7, %v252_v56, %v250_v57 }
  0x94   : > { %v217_v63 = vmul.f32 %v210_v31, %v200_v61  ;;  %v218_v3 = vmul.f32 %v210_v31, %v203_v62  ;;  %v258_v10 = vsel %vm257_vm8, %v256_v60, %v254_v4 }
  0x96   : > { %v260_v5 = vperm.slane %v217_v63, %v259_v58  ;;  %v264_v9 = vperm.slane %v218_v3, %v263_v59 }
  0x98   : > { %v262_v11 = vsel %vm261_vm9, %v260_v5, %v258_v10 }
  0x99   : > { %v266_v14 = vsel %vm265_vm10, %v264_v9, %v262_v11 }
  0x9a   : > { %491 = vmatmul.msk.f32.vlgmr.msra.gmra.mxu0 %vm267_vm1, %v266_v14 }
 0x117   : > { %v290_v16 = vpop.f32.mrf.mxu0 }
 0x118   : > { %v293_v17 = vmax.f32 %v290_v16, 0.0 }
 0x11a   : > { %500 = vmatmul.msk.f32.vlgmr.msra.gmra.mxu1 %vm294_vm2, %v293_v17 }
 0x197   : > { %v339_v21 = vpop.f32.mrf.mxu1 }
 0x198   : > { %v501_v22 = vmul.f32 -1.442695, %v339_v21 }
 0x19a   : > { %526 = vpow2.f32 %v501_v22 }
 0x1a0   : > { %v527_v23 = vpop.eup %526 }
 0x1a1   : > { %v345_v24 = vadd.f32 1.0, %v527_v23 }
 0x1a3   : > { %528 = vrcp.f32 %v345_v24  ;;  %v357_v29 = vand.u32 2147483648, %v345_v24  ;;  %v355_v31 = vand.u32 2147483647, %v345_v24  ;;  %vm351_vm12 = vweird.f32 %v345_v24 }
 0x1a5   : > { %v358_v26 = vor.u32 1.1754944e-38, %v357_v29  ;;  %vm356_vm14 = vcmp.eq.f32.partialorder %v355_v31, 8.507059e+37 }
 0x1a9   : > { %v529_v25 = vpop.eup %528 }
 0x1aa   : > { %v347_v27 = vmul.f32 %v529_v25, %v345_v24  ;;  %vm352_vm11 = vweird.f32 %v529_v25 }
 0x1ab   : > { %vm353_vm13 = vmor %vm351_vm12, %vm352_vm11 }
 0x1ac   : > { %v348_v28 = vsub.f32 1.0, %v347_v27 }
 0x1ae   : > { %v349_v30 = vmul.f32 %v529_v25, %v348_v28 }
 0x1b0   : > { %v350_v32 = vadd.f32 %v529_v25, %v349_v30 }
 0x1b2   : > { %v354_v33 = vsel %vm353_vm13, %v529_v25, %v350_v32 }
 0x1b3   : > { %v359_v34 = vsel %vm356_vm14, %v358_v26, %v354_v33 }
 0x1b4   : > { %v361_v35 = vperm.slane %v359_v34, 0 }
 0x1b6   : > { %378 = vperm.xlu1 %517, %v361_v35   ;;  %372 = vperm.xlu0 %516, %v361_v35  }
 0x1b7   : > { %366 = vperm.xlu2 %515, %v361_v35  }
 0x1be   : > { %520 = vset.pattern.permute.xlu1 %v394_v36  ;;  %523 = vset.pattern.permute.xlu0 %v406_v38 }
 0x1bf   : > { %518 = vset.pattern.permute.xlu2 %v382_v37 }
 0x1c6   : > { %396 = vperm.xlu1 %520, %v361_v35  }
 0x1c7   : > { %384 = vperm.xlu2 %518, %v361_v35  }
 0x1ce   : > { %522 = vset.pattern.permute.xlu1 %v406_v38 }
 0x1cf   : > { %519 = vset.pattern.permute.xlu2 %v388_v39 }
 0x1d6   : > { %408 = vperm.xlu1 %522, %v361_v35  }
 0x1d7   : > { %390 = vperm.xlu2 %519, %v361_v35  }
 0x1df   : > { %521 = vset.pattern.permute.xlu2 %v400_v40 }
 0x1e7   : > { %402 = vperm.xlu2 %521, %v361_v35  }
 0x211   : > { %v367_v41 = vpop.permute.xlu2 %366 }
 0x212   : > { %v410_v42 = vmul.f32 %v367_v41, %v575_v0 }
 0x214   : > { %418 = vst.msk [vmem:[%s170_s11] sm:$0xff] %vm179_vm0, %v410_v42 }
 0x221   : > { %v385_v43 = vpop.permute.xlu2 %384 }
 0x222   : > { %v413_v44 = vmul.f32 %v385_v43, %v589_v7 }
 0x224   : > { %421 = vst.msk [vmem:[%s170_s11 + $0x18] sm:$0xff] %vm179_vm0, %v413_v44 }
 0x228   : > { %v379_v45 = vpop.permute.xlu1 %378  ;;  %v373_v46 = vpop.permute.xlu0 %372 }
 0x229   : > { %v412_v47 = vmul.f32 %v379_v45, %v577_v1  ;;  %v411_v48 = vmul.f32 %v373_v46, %v587_v6 }
 0x22b   : > { %420 = vst.msk [vmem:[%s170_s11 + $0x10] sm:$0xff] %vm179_vm0, %v412_v47 }
 0x22c   : > { %419 = vst.msk [vmem:[%s170_s11 + $0x8] sm:$0xff] %vm179_vm0, %v411_v48 }
 0x231   : > { %v391_v49 = vpop.permute.xlu2 %390 }
 0x232   : > { %v414_v0 = vmul.f32 %v391_v49, %v579_v2 }
 0x234   : > { %422 = vst.msk [vmem:[%s170_s11 + $0x20] sm:$0xff] %vm179_vm0, %v414_v0 }
 0x238   : > { %v397_v50 = vpop.permute.xlu1 %396 }
 0x239   : > { %v415_v7 = vmul.f32 %v397_v50, %v591_v8 }
 0x23b   : > { %423 = vst.msk [vmem:[%s170_s11 + $0x28] sm:$0xff] %vm179_vm0, %v415_v7 }
 0x241   : > { %v403_v51 = vpop.permute.xlu2 %402 }
 0x242   : > { %v416_v52 = vmul.f32 %v403_v51, %v599_v12 }
 0x244   : > { %424 = vst.msk [vmem:[%s170_s11 + $0x30] sm:$0xff] %vm179_vm0, %v416_v52 }
 0x248   : > { %v409_v1 = vpop.permute.xlu1 %408 }
 0x249   : > { %v417_v6 = vmul.f32 %v409_v1, %v601_v13 }
 0x24b   : > { %425 = vst.msk [vmem:[%s170_s11 + $0x38] sm:$0xff] %vm179_vm0, %v417_v6 }
 0x24c PF: > { %s13_s12 = sadd.s32 1, %s536_s12  }
 0x24d   : > { %p10_p4 = scmp.ge.s32.totalorder %s13_s12, 6  }
 0x24f   :  { %12 = sbr.rel (!%p10_p4) target bundleno = 1 (0x1), region = 62 }

</bundles_post_ra>
